<compile_context>
chip_gen: v7x
topology: tpu7x:2x2x1
jax: 0.10.0
libtpu: 0.0.40
codegen_flags: <defaults>
</compile_context>

<pallas_src>
import jax
import jax.numpy as jnp
from jax.experimental import pallas as pl
from jax.experimental.pallas import tpu as pltpu

LANE = 128  # TPU lane width; hidden/output feature dims are padded to this.


def _round_up(x, m):
    return ((x + m - 1) // m) * m


def dqn_kernel(s0_ref, s1_ref, w1_ref, w234_ref, b_ref, out_ref):
    s0 = s0_ref[...]                       # (b_tile, S)
    s1 = s1_ref[...]
    diff = jnp.abs(s1 - s0)
    S = s0.shape[-1]

    b1 = b_ref[0:1, :]                     # (1, 128) rows of the packed bias tile
    b2 = b_ref[1:2, :]
    b3 = b_ref[2:3, :]
    b4 = b_ref[3:4, :]

    # Layer 1: cat([s0, |s1-s0|, s1]) @ W1 + b1 expressed as three accumulating
    # matmuls on static row-slices of the resident (3S, 128) W1 tile.
    h = (jnp.dot(s0, w1_ref[0 * S:1 * S, :], preferred_element_type=jnp.float32)
         + jnp.dot(diff, w1_ref[1 * S:2 * S, :], preferred_element_type=jnp.float32)
         + jnp.dot(s1, w1_ref[2 * S:3 * S, :], preferred_element_type=jnp.float32)
         + b1)
    h = jnp.maximum(h, 0.0)

    # Linear(120, 60) + ReLU   (padded to 128x128)
    h = jnp.dot(h, w234_ref[0], preferred_element_type=jnp.float32) + b2
    h = jnp.maximum(h, 0.0)

    # Linear(60, 30) + ReLU    (padded to 128x128)
    h = jnp.dot(h, w234_ref[1], preferred_element_type=jnp.float32) + b3
    h = jnp.maximum(h, 0.0)

    # Linear(30, action_size)  (padded to 128x128); padded output lanes are 0.
    out = jnp.dot(h, w234_ref[2], preferred_element_type=jnp.float32) + b4
    out_ref[...] = out.astype(out_ref.dtype)


def init_params(key, states_size, action_size):
    """PyTorch-style nn.Linear init: U(-1/sqrt(fan_in), 1/sqrt(fan_in)).
    Weights are stored already transposed to [in, out]; biases are [1, out]."""
    dims = [(states_size * 3, 120), (120, 60), (60, 30), (30, action_size)]
    params = []
    for fan_in, fan_out in dims:
        key, kw, kb = jax.random.split(key, 3)
        bound = 1.0 / float(fan_in) ** 0.5
        w = jax.random.uniform(kw, (fan_in, fan_out), jnp.float32, -bound, bound)
        b = jax.random.uniform(kb, (1, fan_out), jnp.float32, -bound, bound)
        params.append((w, b))
    return params


def pack_params(params, states_size):
    """Pack parameters into 3 VMEM-resident tiles:
       w1p   : (3*S, 128)  -- rows [W1(s0); W1(|diff|); W1(s1)], cols padded to 128
       w234  : (3, 128, 128) -- W2, W3, W4 zero-padded to 128x128
       biases: (8, 128)    -- rows 0..3 = b1..b4 (zero-padded), rows 4..7 zero
    Zero padding is exact: padded weight rows/cols and bias lanes stay zero
    through every ReLU, so padded output lanes are exactly 0 and get sliced off."""
    (w1, b1), (w2, b2), (w3, b3), (w4, b4) = params

    def pad2(a, rows, cols):
        return jnp.pad(a, ((0, rows - a.shape[0]), (0, cols - a.shape[1])))

    w1p = pad2(w1, w1.shape[0], LANE)                       # (3S, 128)
    w234 = jnp.stack([pad2(w2, LANE, LANE),
                      pad2(w3, LANE, LANE),
                      pad2(w4, LANE, LANE)])                # (3, 128, 128)
    biases = jnp.zeros((8, LANE), jnp.float32)
    for r, b in enumerate((b1, b2, b3, b4)):
        biases = biases.at[r, :b.shape[1]].set(b[0])
    return w1p, w234, biases


def dqn_forward(state_t, state_t_plus_1, packed, action_size, *, b_tile=512):
    w1p, w234, biases = packed
    batch, S = state_t.shape

    # Effective batch tile: multiple of 8 sublanes, no larger than the batch.
    n_rows = _round_up(max(batch, 1), 8)
    b_tile = _round_up(max(8, min(b_tile, n_rows)), 8)
    batch_pad = _round_up(n_rows, b_tile)
    grid = (batch_pad // b_tile,)

    # Only the batch dim is padded (with zero rows); the S=16 lane dim is NOT
    # padded -- the kernel reads it as a full-extent last block dim.
    s0 = jnp.pad(state_t, ((0, batch_pad - batch), (0, 0)))
    s1 = jnp.pad(state_t_plus_1, ((0, batch_pad - batch), (0, 0)))

    in_tile = pl.BlockSpec((b_tile, S), lambda i: (i, 0))
    # Weights/biases: same block for every grid step -> DMA'd once, VMEM-resident.
    w1_spec = pl.BlockSpec(w1p.shape, lambda i: (0, 0))
    w234_spec = pl.BlockSpec(w234.shape, lambda i: (0, 0, 0))
    b_spec = pl.BlockSpec(biases.shape, lambda i: (0, 0))
    out_spec = pl.BlockSpec((b_tile, LANE), lambda i: (i, 0))

    weight_bytes = sum(int(a.size) * a.dtype.itemsize for a in (w1p, w234, biases))
    io_bytes = int(batch_pad) * (2 * S + LANE) * 4
    flops = 2 * int(batch_pad) * (3 * S * LANE + 3 * LANE * LANE)

    out = pl.pallas_call(
        dqn_kernel,
        out_shape=jax.ShapeDtypeStruct((batch_pad, LANE), jnp.float32),
        grid=grid,
        in_specs=[in_tile, in_tile, w1_spec, w234_spec, b_spec],
        out_specs=out_spec,
        compiler_params=pltpu.CompilerParams(
            dimension_semantics=("parallel",)),
        cost_estimate=pl.CostEstimate(
            flops=flops,
            transcendentals=0,
            bytes_accessed=io_bytes + weight_bytes),
    )(s0, s1, w1p, w234, biases)

    return out[:batch, :action_size]


def dqn_reference(state_t, state_t_plus_1, params):
    x = jnp.concatenate(
        [state_t, jnp.abs(state_t_plus_1 - state_t), state_t_plus_1], axis=1)
    (w1, b1), (w2, b2), (w3, b3), (w4, b4) = params
    h = jnp.maximum(x @ w1 + b1, 0.0)
    h = jnp.maximum(h @ w2 + b2, 0.0)
    h = jnp.maximum(h @ w3 + b3, 0.0)
    return h @ w4 + b4


if __name__ == "__main__":
    states_size = 16
    action_size = 4
    batch = 2

    key = jax.random.PRNGKey(0)
    key, k0, k1 = jax.random.split(key, 3)
    state_t = jax.random.normal(k0, (batch, states_size), jnp.float32)
    state_t_plus_1 = jax.random.normal(k1, (batch, states_size), jnp.float32)

    params = init_params(key, states_size, action_size)
    packed = pack_params(params, states_size)

    out = dqn_forward(state_t, state_t_plus_1, packed, action_size)
    out = jax.block_until_ready(out)

    ref = dqn_reference(state_t, state_t_plus_1, params)
    assert out.shape == (batch, action_size)
    assert jnp.allclose(out, ref, atol=1e-4, rtol=1e-4)

    print("KERNEL_OK")
</pallas_src>

<mosaic_0001>
module attributes {stable_mosaic.version = 11 : i64} {
  func.func @dqn_kernel(%arg0: i32, %arg1: memref<8x16xf32, #tpu.memory_space<vmem>>, %arg2: memref<8x16xf32, #tpu.memory_space<vmem>>, %arg3: memref<48x128xf32, #tpu.memory_space<vmem>>, %arg4: memref<3x128x128xf32, #tpu.memory_space<vmem>>, %arg5: memref<8x128xf32, #tpu.memory_space<vmem>>, %arg6: memref<8x128xf32, #tpu.memory_space<vmem>>) attributes {dimension_semantics = [#tpu.dimension_semantics<parallel>], iteration_bounds = array<i64: 1>, scalar_prefetch = 0 : i64, scratch_operands = 0 : i64, tpu.core_type = #tpu.core_type<tc>, window_params = [{transform_indices = @transform_0, window_bounds = array<i64: 8, 16>}, {transform_indices = @transform_1, window_bounds = array<i64: 8, 16>}, {pipeline_mode = #tpu.pipeline_mode<synchronous>, transform_indices = @transform_2, window_bounds = array<i64: 48, 128>}, {pipeline_mode = #tpu.pipeline_mode<synchronous>, transform_indices = @transform_3, window_bounds = array<i64: 3, 128, 128>}, {pipeline_mode = #tpu.pipeline_mode<synchronous>, transform_indices = @transform_4, window_bounds = array<i64: 8, 128>}, {transform_indices = @transform_5, window_bounds = array<i64: 8, 128>}]} {
    %c0 = arith.constant 0 : index
    %c0_0 = arith.constant 0 : index
    %0 = vector.load %arg1[%c0, %c0_0] : memref<8x16xf32, #tpu.memory_space<vmem>>, vector<8x16xf32>
    %c0_1 = arith.constant 0 : index
    %c0_2 = arith.constant 0 : index
    %1 = vector.load %arg2[%c0_1, %c0_2] : memref<8x16xf32, #tpu.memory_space<vmem>>, vector<8x16xf32>
    %2 = arith.subf %1, %0 : vector<8x16xf32>
    %3 = math.absf %2 : vector<8x16xf32>
    %c0_3 = arith.constant 0 : index
    %c0_4 = arith.constant 0 : index
    %4 = vector.load %arg5[%c0_3, %c0_4] : memref<8x128xf32, #tpu.memory_space<vmem>>, vector<1x128xf32>
    %c1 = arith.constant 1 : index
    %c0_5 = arith.constant 0 : index
    %5 = vector.load %arg5[%c1, %c0_5] : memref<8x128xf32, #tpu.memory_space<vmem>>, vector<1x128xf32>
    %c2 = arith.constant 2 : index
    %c0_6 = arith.constant 0 : index
    %6 = vector.load %arg5[%c2, %c0_6] : memref<8x128xf32, #tpu.memory_space<vmem>>, vector<1x128xf32>
    %c3 = arith.constant 3 : index
    %c0_7 = arith.constant 0 : index
    %7 = vector.load %arg5[%c3, %c0_7] : memref<8x128xf32, #tpu.memory_space<vmem>>, vector<1x128xf32>
    %c0_8 = arith.constant 0 : index
    %c0_9 = arith.constant 0 : index
    %8 = vector.load %arg3[%c0_8, %c0_9] : memref<48x128xf32, #tpu.memory_space<vmem>>, vector<16x128xf32>
    %cst = arith.constant dense<0.000000e+00> : vector<8x128xf32>
    %9 = tpu.matmul %0, %8, %cst {dimension_numbers = #tpu.dot_dimension_numbers<[1], [0], [0], [1], [0, 0, 1, 1], [], []>} : vector<8x16xf32>, vector<16x128xf32>, vector<8x128xf32> -> vector<8x128xf32>
    %c16 = arith.constant 16 : index
    %c0_10 = arith.constant 0 : index
    %10 = vector.load %arg3[%c16, %c0_10] : memref<48x128xf32, #tpu.memory_space<vmem>>, vector<16x128xf32>
    %cst_11 = arith.constant dense<0.000000e+00> : vector<8x128xf32>
    %11 = tpu.matmul %3, %10, %cst_11 {dimension_numbers = #tpu.dot_dimension_numbers<[1], [0], [0], [1], [0, 0, 1, 1], [], []>} : vector<8x16xf32>, vector<16x128xf32>, vector<8x128xf32> -> vector<8x128xf32>
    %12 = arith.addf %9, %11 : vector<8x128xf32>
    %c32 = arith.constant 32 : index
    %c0_12 = arith.constant 0 : index
    %13 = vector.load %arg3[%c32, %c0_12] : memref<48x128xf32, #tpu.memory_space<vmem>>, vector<16x128xf32>
    %cst_13 = arith.constant dense<0.000000e+00> : vector<8x128xf32>
    %14 = tpu.matmul %1, %13, %cst_13 {dimension_numbers = #tpu.dot_dimension_numbers<[1], [0], [0], [1], [0, 0, 1, 1], [], []>} : vector<8x16xf32>, vector<16x128xf32>, vector<8x128xf32> -> vector<8x128xf32>
    %15 = arith.addf %12, %14 : vector<8x128xf32>
    %16 = vector.broadcast %4 : vector<1x128xf32> to vector<8x128xf32>
    %17 = arith.addf %15, %16 : vector<8x128xf32>
    %cst_14 = arith.constant 0.000000e+00 : f32
    %18 = vector.broadcast %cst_14 : f32 to vector<8x128xf32>
    %19 = arith.maximumf %17, %18 : vector<8x128xf32>
    %c0_15 = arith.constant 0 : index
    %c0_16 = arith.constant 0 : index
    %c0_17 = arith.constant 0 : index
    %20 = vector.load %arg4[%c0_15, %c0_16, %c0_17] : memref<3x128x128xf32, #tpu.memory_space<vmem>>, vector<1x128x128xf32>
    %21 = vector.shape_cast %20 : vector<1x128x128xf32> to vector<128x128xf32>
    %cst_18 = arith.constant dense<0.000000e+00> : vector<8x128xf32>
    %22 = tpu.matmul %19, %21, %cst_18 {dimension_numbers = #tpu.dot_dimension_numbers<[1], [0], [0], [1], [0, 0, 1, 1], [], []>} : vector<8x128xf32>, vector<128x128xf32>, vector<8x128xf32> -> vector<8x128xf32>
    %23 = vector.broadcast %5 : vector<1x128xf32> to vector<8x128xf32>
    %24 = arith.addf %22, %23 : vector<8x128xf32>
    %cst_19 = arith.constant 0.000000e+00 : f32
    %25 = vector.broadcast %cst_19 : f32 to vector<8x128xf32>
    %26 = arith.maximumf %24, %25 : vector<8x128xf32>
    %c1_20 = arith.constant 1 : index
    %c0_21 = arith.constant 0 : index
    %c0_22 = arith.constant 0 : index
    %27 = vector.load %arg4[%c1_20, %c0_21, %c0_22] : memref<3x128x128xf32, #tpu.memory_space<vmem>>, vector<1x128x128xf32>
    %28 = vector.shape_cast %27 : vector<1x128x128xf32> to vector<128x128xf32>
    %cst_23 = arith.constant dense<0.000000e+00> : vector<8x128xf32>
    %29 = tpu.matmul %26, %28, %cst_23 {dimension_numbers = #tpu.dot_dimension_numbers<[1], [0], [0], [1], [0, 0, 1, 1], [], []>} : vector<8x128xf32>, vector<128x128xf32>, vector<8x128xf32> -> vector<8x128xf32>
    %30 = vector.broadcast %6 : vector<1x128xf32> to vector<8x128xf32>
    %31 = arith.addf %29, %30 : vector<8x128xf32>
    %cst_24 = arith.constant 0.000000e+00 : f32
    %32 = vector.broadcast %cst_24 : f32 to vector<8x128xf32>
    %33 = arith.maximumf %31, %32 : vector<8x128xf32>
    %c2_25 = arith.constant 2 : index
    %c0_26 = arith.constant 0 : index
    %c0_27 = arith.constant 0 : index
    %34 = vector.load %arg4[%c2_25, %c0_26, %c0_27] : memref<3x128x128xf32, #tpu.memory_space<vmem>>, vector<1x128x128xf32>
    %35 = vector.shape_cast %34 : vector<1x128x128xf32> to vector<128x128xf32>
    %cst_28 = arith.constant dense<0.000000e+00> : vector<8x128xf32>
    %36 = tpu.matmul %33, %35, %cst_28 {dimension_numbers = #tpu.dot_dimension_numbers<[1], [0], [0], [1], [0, 0, 1, 1], [], []>} : vector<8x128xf32>, vector<128x128xf32>, vector<8x128xf32> -> vector<8x128xf32>
    %37 = vector.broadcast %7 : vector<1x128xf32> to vector<8x128xf32>
    %38 = arith.addf %36, %37 : vector<8x128xf32>
    %c0_29 = arith.constant 0 : index
    %c0_30 = arith.constant 0 : index
    %39 = vector.load %arg6[%c0_29, %c0_30] : memref<8x128xf32, #tpu.memory_space<vmem>>, vector<8x128xf32>
    tpu.vector_store %arg6[%c0_29, %c0_30], %38 {strides = array<i32>} : memref<8x128xf32, #tpu.memory_space<vmem>>, vector<8x128xf32>,
    return
  }
  func.func @transform_0(%arg0: i32) -> (i32, i32) {
    %c0_i32 = arith.constant 0 : i32
    %c0_i32_0 = arith.constant 0 : i32
    return %arg0, %c0_i32 : i32, i32
  }
  func.func @transform_1(%arg0: i32) -> (i32, i32) {
    %c0_i32 = arith.constant 0 : i32
    %c0_i32_0 = arith.constant 0 : i32
    return %arg0, %c0_i32 : i32, i32
  }
  func.func @transform_2(%arg0: i32) -> (i32, i32) {
    %c0_i32 = arith.constant 0 : i32
    %c0_i32_0 = arith.constant 0 : i32
    %c0_i32_1 = arith.constant 0 : i32
    return %c0_i32, %c0_i32_0 : i32, i32
  }
  func.func @transform_3(%arg0: i32) -> (i32, i32, i32) {
    %c0_i32 = arith.constant 0 : i32
    %c0_i32_0 = arith.constant 0 : i32
    %c0_i32_1 = arith.constant 0 : i32
    %c0_i32_2 = arith.constant 0 : i32
    return %c0_i32, %c0_i32_0, %c0_i32_1 : i32, i32, i32
  }
  func.func @transform_4(%arg0: i32) -> (i32, i32) {
    %c0_i32 = arith.constant 0 : i32
    %c0_i32_0 = arith.constant 0 : i32
    %c0_i32_1 = arith.constant 0 : i32
    return %c0_i32, %c0_i32_0 : i32, i32
  }
  func.func @transform_5(%arg0: i32) -> (i32, i32) {
    %c0_i32 = arith.constant 0 : i32
    %c0_i32_0 = arith.constant 0 : i32
    return %arg0, %c0_i32 : i32, i32
  }
}

</mosaic_0001>

<bundles_post_ra>
// kernel: tpu_custom_call.1
= control target key start
LH: loop header
LB: loop body
LE: loop exit
PB: predicated region body
PF: predicated region fallthrough
CT: control target
= control target key end

     0   :  { %10 = vsyncpa [#allocation3], 0  ;;  %s1161_s0 = inlined_call_operand.hbm [shape: f32[8,16], index: 0, kind: input, shape index: {}]   ;;  %s1162_s1 = inlined_call_operand.hbm [shape: f32[8,16], index: 1, kind: input, shape index: {}]   ;;  %s1163_s2 = inlined_call_operand.hbm [shape: f32[48,128], index: 2, kind: input, shape index: {}]   ;;  %s1164_s3 = inlined_call_operand.hbm [shape: f32[3,128,128], index: 3, kind: input, shape index: {}]   ;;  %s1165_s4 = inlined_call_operand.vmem [shape: f32[8,128], index: 4, kind: input, shape index: {}]   ;;  %s1166_s5 = inlined_call_operand.hbm [shape: f32[8,128], index: 5, kind: output, shape index: {}]  }
   0x1   :  { %11 = vsyncpa [#allocation6], 0 }
   0x2   :  { %12 = vsyncpa [#allocation9], 0 }
   0x3   :  { %13 = vsyncpa [#allocation4], 0  ;;  %s1007_s18 = smov [#allocation5]   ;;  %s1008_s20 = smov [#allocation2]  }
   0x4   :  { %s30_s19 = sshll.u32 %s1007_s18, 4  ;;  %s20_s21 = sshll.u32 %s1008_s20, 4  ;;  %s31_s19 = int_to_ptr.vmem [resolvable:$true] %s30_s19  ;;  %s21_s21 = int_to_ptr.vmem [resolvable:$true] %s20_s21 }
   0x5   :  { %s889_s24 = scalar_lea.hbm %s1162_s1, 128 }
   0x6   :  { %p890_p0 = scmp.ne.s32.totalorder %s1162_s1, %s889_s24  ;;  %p893_p1 = scmp.lt.u32.totalorder %s889_s24, %s1162_s1 }
   0x8   :  { %p895_p2 = pnand %p893_p1, %p890_p0 }
   0xa   :  { %898 = shalt.err (!%p895_p2)
}
   0xb   :  { %s899_s29 = scalar_lea.vmem %s31_s19, 128  ;;  %p904_p4 = scmp.lt.s32.totalorder %s31_s19, %s31_s19 }
   0xc   :  { %p900_p3 = scmp.ne.s32.totalorder %s31_s19, %s899_s29  ;;  %p905_p5 = scmp.lt.s32.totalorder %s899_s29, %s899_s29 }
   0xe   :  { %p906_p6 = por %p905_p5, %p904_p4 }
  0x10   :  { %p907_p7 = pnand %p906_p6, %p900_p3 }
  0x12   :  { %910 = shalt.err (!%p907_p7)
}
  0x13   :  { %33 = dma.hbm_to_vmem [thread:$0]  %s1162_s1, 128, %s31_s19, [#allocation6]  }
  0x14   :  { %s911_s9 = scalar_lea.hbm %s1161_s0, 128 }
  0x15   :  { %p912_p8 = scmp.ne.s32.totalorder %s1161_s0, %s911_s9  ;;  %p915_p9 = scmp.lt.u32.totalorder %s911_s9, %s1161_s0 }
  0x17   :  { %p917_p10 = pnand %p915_p9, %p912_p8 }
  0x19   :  { %920 = shalt.err (!%p917_p10)
}
  0x1a   :  { %s921_s14 = scalar_lea.vmem %s21_s21, 128  ;;  %p926_p12 = scmp.lt.s32.totalorder %s21_s21, %s21_s21 }
  0x1b   :  { %p922_p11 = scmp.ne.s32.totalorder %s21_s21, %s921_s14  ;;  %p927_p13 = scmp.lt.s32.totalorder %s921_s14, %s921_s14 }
  0x1d   :  { %p928_p0 = por %p927_p13, %p926_p12 }
  0x1f   :  { %p929_p1 = pnand %p928_p0, %p922_p11 }
  0x21   :  { %932 = shalt.err (!%p929_p1)
}
  0x22   :  { %23 = dma.hbm_to_vmem [thread:$0]  %s1161_s0, 128, %s21_s21, [#allocation3]  }
  0x23   :  { %s1009_s16 = smov [#allocation7]   ;;  %s933_s20 = scalar_lea.hbm %s1163_s2, 768 }
  0x24   :  { %s39_s17 = sshll.u32 %s1009_s16, 4  ;;  %p934_p2 = scmp.ne.s32.totalorder %s1163_s2, %s933_s20  ;;  %s40_s17 = int_to_ptr.vmem [resolvable:$true] %s39_s17 }
  0x25   :  { %p937_p3 = scmp.lt.u32.totalorder %s933_s20, %s1163_s2 }
  0x27   :  { %p939_p4 = pnand %p937_p3, %p934_p2 }
  0x29   :  { %942 = shalt.err (!%p939_p4)
}
  0x2a   :  { %s943_s26 = scalar_lea.vmem %s40_s17, 768  ;;  %p948_p6 = scmp.lt.s32.totalorder %s40_s17, %s40_s17 }
  0x2b   :  { %p944_p5 = scmp.ne.s32.totalorder %s40_s17, %s943_s26  ;;  %p949_p7 = scmp.lt.s32.totalorder %s943_s26, %s943_s26 }
  0x2d   :  { %p950_p8 = por %p949_p7, %p948_p6 }
  0x2f   :  { %p951_p9 = pnand %p950_p8, %p944_p5 }
  0x31   :  { %954 = shalt.err (!%p951_p9)
}
  0x32   :  { %s1010_s0 = smov 128   ;;  %s1011_s21 = smov 8  }
  0x33   :  { %45 = dma.hbm_to_vmem [thread:$0]  %s1163_s2, 768, %s40_s17, [#allocation6], %s1010_s0, %s1010_s0, %s1011_s21  }
  0x34   :  { %s1012_s29 = smov [#allocation8]   ;;  %s955_s8 = scalar_lea.hbm %s1164_s3, 6144 }
  0x35   :  { %s51_s30 = sshll.u32 %s1012_s29, 4  ;;  %p956_p10 = scmp.ne.s32.totalorder %s1164_s3, %s955_s8  ;;  %s52_s30 = int_to_ptr.vmem [resolvable:$true] %s51_s30 }
  0x36   :  { %p959_p11 = scmp.lt.u32.totalorder %s955_s8, %s1164_s3 }
  0x38   :  { %p961_p12 = pnand %p959_p11, %p956_p10 }
  0x3a   :  { %964 = shalt.err (!%p961_p12)
}
  0x3b   :  { %s965_s13 = scalar_lea.vmem %s52_s30, 6144  ;;  %p970_p0 = scmp.lt.s32.totalorder %s52_s30, %s52_s30 }
  0x3c   :  { %p966_p13 = scmp.ne.s32.totalorder %s52_s30, %s965_s13  ;;  %p971_p1 = scmp.lt.s32.totalorder %s965_s13, %s965_s13 }
  0x3e   :  { %p972_p2 = por %p971_p1, %p970_p0 }
  0x40   :  { %p973_p3 = pnand %p972_p2, %p966_p13 }
  0x42   :  { %976 = shalt.err (!%p973_p3)
}
  0x43   :  { %57 = dma.hbm_to_vmem [thread:$0]  %s1164_s3, 6144, %s52_s30, [#allocation9], %s1010_s0, %s1010_s0, %s1011_s21  }
  0x44   :  { %999 = dma.done.wait [#allocation3], 128  }
  0x45   :  { %1000 = vsyncadd [#allocation3], 4294967168 }
  0x46   :  { %1001 = dma.done.wait [#allocation6], 896  }
  0x47   :  { %1002 = vsyncadd [#allocation6], 4294966400 }
  0x48   :  { %1003 = dma.done.wait [#allocation9], 6144  }
  0x49   :  { %1004 = vsyncadd [#allocation9], 4294961152  ;;  %v1013_v0 = vmov 0.0|0.0   ;;  %vm1014_vm0 = vmmov 0   ;;  %v1015_v1 = vmov 0.0   ;;  %v82_v2 = vld [vmem:[#allocation7 + $0x10] sm:$0xff] }
  0x4a   :  { %798 = vmatprep.subr.bf16.mxu0 %v1013_v0  ;;  %676 = vmatprep.mubr.msk.f32.mxu0 %vm1014_vm0, %v1015_v1  ;;  %v83_v3 = vld [vmem:[#allocation7 + $0x18] sm:$0xff]  ;;  %v72_v4 = vld [vmem:[#allocation2] sm:$0xff]  ;;  %v80_v7 = vld [vmem:[#allocation7] sm:$0xff]  ;;  %vm84_vm1 = vcmask 130048   ;;  %s1016_s22 = smov [#allocation10]  }
  0x4b   :  { %807 = vmatprep.subr.bf16.mxu1 %v1013_v0  ;;  %725 = vmatprep.mubr.msk.f32.mxu1 %vm1014_vm0, %v1015_v1  ;;  %v799_v5 = vpack.c.bf16 %v83_v3, %v82_v2  ;;  %v73_v6 = vld [vmem:[#allocation5] sm:$0xff]  ;;  %v81_v8 = vld [vmem:[#allocation7 + $0x8] sm:$0xff]  ;;  %v313_v10 = vld [vmem:[#allocation8] sm:$0xff]  ;;  %s594_s23 = sshll.u32 %s1016_s22, 4  ;;  %s595_s23 = int_to_ptr.vmem [resolvable:$true] %s594_s23 }
  0x4c   :  { %v74_v9 = vsub.f32 %v73_v6, %v72_v4  ;;  %v802_v11 = vpack.c.bf16 %v81_v8, %v80_v7  ;;  %v314_v12 = vld [vmem:[#allocation8 + $0x8] sm:$0xff]  ;;  %v315_v13 = vld [vmem:[#allocation8 + $0x10] sm:$0xff]  ;;  %v316_v14 = vld [vmem:[#allocation8 + $0x18] sm:$0xff]  ;;  %s977_s24 = scalar_lea.vmem %s595_s23, 128  ;;  %p982_p5 = scmp.lt.s32.totalorder %s595_s23, %s595_s23 }
  0x4d   :  { %800 = vmatpush3.bf16.msra.mxu0 %v799_v5  ;;  %v231_v16 = vld [vmem:[#allocation7 + $0x20] sm:$0xff]  ;;  %v232_v17 = vld [vmem:[#allocation7 + $0x28] sm:$0xff]  ;;  %v808_v18 = vpack.c.bf16 %v314_v12, %v313_v10  ;;  %v811_v19 = vpack.c.bf16 %v316_v14, %v315_v13  ;;  %v317_v21 = vld [vmem:[#allocation8 + $0x20] sm:$0xff]  ;;  %p978_p4 = scmp.ne.s32.totalorder %s595_s23, %s977_s24  ;;  %p983_p6 = scmp.lt.s32.totalorder %s977_s24, %s977_s24 }
  0x4e   :  { %v75_v15 = vand.u32 2147483647, %v74_v9  ;;  %801 = vmatprep.subr.bf16.mxu0 %v1013_v0  ;;  %v805_v20 = vpack.c.bf16 %v232_v17, %v231_v16  ;;  %v318_v22 = vld [vmem:[#allocation8 + $0x28] sm:$0xff]  ;;  %v319_v24 = vld [vmem:[#allocation8 + $0x30] sm:$0xff]  ;;  %v320_v25 = vld [vmem:[#allocation8 + $0x38] sm:$0xff] }
  0x4f   :  { %809 = vmatpush3.bf16.msra.mxu1 %v808_v18  ;;  %v814_v23 = vpack.c.bf16 %v318_v22, %v317_v21  ;;  %v817_v26 = vpack.c.bf16 %v320_v25, %v319_v24  ;;  %v321_v27 = vld [vmem:[#allocation8 + $0x40] sm:$0xff]  ;;  %v322_v28 = vld [vmem:[#allocation8 + $0x48] sm:$0xff]  ;;  %v323_v30 = vld [vmem:[#allocation8 + $0x50] sm:$0xff]  ;;  %p984_p7 = por %p983_p6, %p982_p5 }
  0x50   :  { %677 = vmatmul.mubr.msk.f32.vlgmr.msra.gmra.mrb[0].mxu0 %vm84_vm1, %v75_v15  ;;  %810 = vmatprep.subr.bf16.mxu1 %v1013_v0  ;;  %v820_v29 = vpack.c.bf16 %v322_v28, %v321_v27  ;;  %v324_v31 = vld [vmem:[#allocation8 + $0x58] sm:$0xff]  ;;  %v325_v33 = vld [vmem:[#allocation8 + $0x60] sm:$0xff]  ;;  %v326_v34 = vld [vmem:[#allocation8 + $0x68] sm:$0xff] }
  0x51   :  { %803 = vmatpush3.bf16.msra.mxu0 %v802_v11  ;;  %683 = vmatprep.mubr.msk.f32.mxu0 %vm1014_vm0, %v1015_v1  ;;  %v823_v32 = vpack.c.bf16 %v324_v31, %v323_v30  ;;  %v826_v35 = vpack.c.bf16 %v326_v34, %v325_v33  ;;  %v327_v36 = vld [vmem:[#allocation8 + $0x70] sm:$0xff]  ;;  %v328_v37 = vld [vmem:[#allocation8 + $0x78] sm:$0xff]  ;;  %v405_v39 = vld [vmem:[#allocation8 + $0x80] sm:$0xff]  ;;  %p985_p8 = pnand %p984_p7, %p978_p4 }
  0x52   :  { %804 = vmatprep.subr.bf16.mxu0 %v1013_v0  ;;  %v829_v38 = vpack.c.bf16 %v328_v37, %v327_v36  ;;  %v406_v40 = vld [vmem:[#allocation8 + $0x88] sm:$0xff]  ;;  %v407_v41 = vld [vmem:[#allocation8 + $0x90] sm:$0xff]  ;;  %v408_v43 = vld [vmem:[#allocation8 + $0x98] sm:$0xff] }
  0x53   :  { %812 = vmatpush3.bf16.msra.mxu1 %v811_v19  ;;  %v832_v42 = vpack.c.bf16 %v406_v40, %v405_v39  ;;  %v835_v44 = vpack.c.bf16 %v408_v43, %v407_v41  ;;  %v409_v45 = vld [vmem:[#allocation8 + $0xa0] sm:$0xff]  ;;  %v410_v46 = vld [vmem:[#allocation8 + $0xa8] sm:$0xff]  ;;  %v411_v48 = vld [vmem:[#allocation8 + $0xb0] sm:$0xff] }
  0x54   :  { %684 = vmatmul.mubr.msk.f32.vlgmr.msra.gmra.mrb[2].mxu0 %vm84_vm1, %v72_v4  ;;  %813 = vmatprep.subr.bf16.mxu1 %v1013_v0  ;;  %v838_v47 = vpack.c.bf16 %v410_v46, %v409_v45  ;;  %v412_v49 = vld [vmem:[#allocation8 + $0xb8] sm:$0xff]  ;;  %v413_v51 = vld [vmem:[#allocation8 + $0xc0] sm:$0xff]  ;;  %v414_v52 = vld [vmem:[#allocation8 + $0xc8] sm:$0xff] }
  0x55   :  { %806 = vmatpush3.bf16.msra.mxu0 %v805_v20  ;;  %690 = vmatprep.mubr.msk.f32.mxu0 %vm1014_vm0, %v1015_v1  ;;  %v841_v50 = vpack.c.bf16 %v412_v49, %v411_v48  ;;  %v844_v53 = vpack.c.bf16 %v414_v52, %v413_v51  ;;  %v415_v54 = vld [vmem:[#allocation8 + $0xd0] sm:$0xff]  ;;  %v416_v55 = vld [vmem:[#allocation8 + $0xd8] sm:$0xff]  ;;  %v417_v57 = vld [vmem:[#allocation8 + $0xe0] sm:$0xff] }
  0x56   :  { %831 = vmatprep.subr.bf16.mxu0 %v1013_v0  ;;  %v847_v56 = vpack.c.bf16 %v416_v55, %v415_v54  ;;  %v418_v58 = vld [vmem:[#allocation8 + $0xe8] sm:$0xff]  ;;  %v608_v3 = vld [vmem:[%s1165_s4] ss:$0 sm:$0xff]  ;;  %v419_v9 = vld [vmem:[#allocation8 + $0xf0] sm:$0xff] }
  0x57   :  { %815 = vmatpush3.bf16.msra.mxu1 %v814_v23  ;;  %v850_v59 = vpack.c.bf16 %v418_v58, %v417_v57  ;;  %v420_v10 = vld [vmem:[#allocation8 + $0xf8] sm:$0xff]  ;;  %v497_v12 = vld [vmem:[#allocation8 + $0x100] sm:$0xff]  ;;  %v498_v13 = vld [vmem:[#allocation8 + $0x108] sm:$0xff] }
  0x58   :  { %691 = vmatmul.mubr.msk.f32.vlgmr.msra.gmra.mrb[4].mxu0 %vm84_vm1, %v73_v6  ;;  %816 = vmatprep.subr.bf16.mxu1 %v1013_v0  ;;  %v853_v11 = vpack.c.bf16 %v420_v10, %v419_v9  ;;  %v499_v14 = vld [vmem:[#allocation8 + $0x110] sm:$0xff]  ;;  %v856_v15 = vpack.c.bf16 %v498_v13, %v497_v12  ;;  %v500_v16 = vld [vmem:[#allocation8 + $0x118] sm:$0xff]  ;;  %v501_v18 = vld [vmem:[#allocation8 + $0x120] sm:$0xff] }
  0x59   :  { %760 = vmatprep.mubr.msk.f32.mxu0 %vm1014_vm0, %v1015_v1  ;;  %833 = vmatpush3.bf16.msra.mxu0 %v832_v42  ;;  %v859_v17 = vpack.c.bf16 %v500_v16, %v499_v14  ;;  %v502_v19 = vld [vmem:[#allocation8 + $0x128] sm:$0xff]  ;;  %v504_v21 = vld [vmem:[#allocation8 + $0x138] sm:$0xff]  ;;  %v505_v23 = vld [vmem:[#allocation8 + $0x140] sm:$0xff] }
  0x5a   :  { %834 = vmatprep.subr.bf16.mxu0 %v1013_v0  ;;  %v862_v20 = vpack.c.bf16 %v502_v19, %v501_v18  ;;  %v506_v24 = vld [vmem:[#allocation8 + $0x148] sm:$0xff]  ;;  %v508_v27 = vld [vmem:[#allocation8 + $0x158] sm:$0xff]  ;;  %v511_v37 = vld [vmem:[#allocation8 + $0x170] sm:$0xff] }
  0x5b   :  { %818 = vmatpush3.bf16.msra.mxu1 %v817_v26  ;;  %v868_v25 = vpack.c.bf16 %v506_v24, %v505_v23  ;;  %v507_v26 = vld [vmem:[#allocation8 + $0x150] sm:$0xff]  ;;  %v510_v30 = vld [vmem:[#allocation8 + $0x168] sm:$0xff]  ;;  %v610_v40 = vld [vmem:[%s1165_s4 + $0x2] ss:$0 sm:$0xff] }
  0x5c   :  { %819 = vmatprep.subr.bf16.mxu1 %v1013_v0  ;;  %v871_v28 = vpack.c.bf16 %v508_v27, %v507_v26 }
  0x5d   :  { %836 = vmatpush3.bf16.msra.mxu0 %v835_v44  ;;  %v611_v44 = vld [vmem:[%s1165_s4 + $0x3] ss:$0 sm:$0xff] }
  0x5e   :  { %837 = vmatprep.subr.bf16.mxu0 %v1013_v0 }
  0x5f   :  { %821 = vmatpush3.bf16.msra.mxu1 %v820_v29  ;;  %v509_v29 = vld [vmem:[#allocation8 + $0x160] sm:$0xff] }
  0x60   :  { %822 = vmatprep.subr.bf16.mxu1 %v1013_v0  ;;  %v874_v31 = vpack.c.bf16 %v510_v30, %v509_v29 }
  0x61   :  { %839 = vmatpush3.bf16.msra.mxu0 %v838_v47 }
  0x62   :  { %840 = vmatprep.subr.bf16.mxu0 %v1013_v0 }
  0x63   :  { %824 = vmatpush3.bf16.msra.mxu1 %v823_v32  ;;  %v609_v32 = vld [vmem:[%s1165_s4 + $0x1] ss:$0 sm:$0xff] }
  0x64   :  { %825 = vmatprep.subr.bf16.mxu1 %v1013_v0 }
  0x65   :  { %842 = vmatpush3.bf16.msra.mxu0 %v841_v50 }
  0x66   :  { %843 = vmatprep.subr.bf16.mxu0 %v1013_v0 }
  0x67   :  { %827 = vmatpush3.bf16.msra.mxu1 %v826_v35 }
  0x68   :  { %828 = vmatprep.subr.bf16.mxu1 %v1013_v0 }
  0x69   :  { %845 = vmatpush3.bf16.msra.mxu0 %v844_v53 }
  0x6a   :  { %846 = vmatprep.subr.bf16.mxu0 %v1013_v0 }
  0x6b   :  { %830 = vmatpush3.bf16.msra.mxu1 %v829_v38  ;;  %v512_v38 = vld [vmem:[#allocation8 + $0x178] sm:$0xff] }
  0x6c   :  { %855 = vmatprep.subr.bf16.mxu1 %v1013_v0  ;;  %v877_v39 = vpack.c.bf16 %v512_v38, %v511_v37 }
  0x6d   :  { %848 = vmatpush3.bf16.msra.mxu0 %v847_v56 }
  0x6e   :  { %849 = vmatprep.subr.bf16.mxu0 %v1013_v0 }
  0x71   :  { %851 = vmatpush3.bf16.msra.mxu0 %v850_v59 }
  0x72   :  { %852 = vmatprep.subr.bf16.mxu0 %v1013_v0 }
  0x75   :  { %854 = vmatpush3.bf16.msra.mxu0 %v853_v11 }
 0x123   :  { %v154_v60 = vpop.f32.mrb[0].mxu0 }
 0x124   :  { %v678_v61 = vpop.f32.mrb[1].mxu0 }
 0x127   :  { %v227_v62 = vpop.f32.mrb[2].mxu0 }
 0x128   :  { %v228_v63 = vadd.f32 %v227_v62, %v154_v60  ;;  %v685_v2 = vpop.f32.mrb[3].mxu0 }
 0x12b   :  { %v302_v4 = vpop.f32.mrb[4].mxu0 }
 0x12c   :  { %v306_v5 = vadd.f32 %v302_v4, %v228_v63  ;;  %v692_v6 = vpop.f32.mrb[5].mxu0 }
 0x12e   :  { %v311_v7 = vadd.f32 %v608_v3, %v306_v5 }
 0x130   :  { %v312_v8 = vmax.f32 %v311_v7, 0.0 }
 0x132   :  { %726 = vmatmul.mubr.f32.vlgmr.msra.gmra.mrb[0].mxu1 %v312_v8 }
 0x133   :  { %795 = vmatprep.mubr.msk.f32.mxu1 %vm1014_vm0, %v1015_v1  ;;  %857 = vmatpush3.bf16.msra.mxu1 %v856_v15  ;;  %v503_v1 = vld [vmem:[#allocation8 + $0x130] sm:$0xff] }
 0x134   :  { %858 = vmatprep.subr.bf16.mxu1 %v1013_v0  ;;  %v865_v22 = vpack.c.bf16 %v504_v21, %v503_v1 }
 0x137   :  { %860 = vmatpush3.bf16.msra.mxu1 %v859_v17 }
 0x138   :  { %861 = vmatprep.subr.bf16.mxu1 %v1013_v0 }
 0x13b   :  { %863 = vmatpush3.bf16.msra.mxu1 %v862_v20 }
 0x13c   :  { %864 = vmatprep.subr.bf16.mxu1 %v1013_v0 }
 0x13f   :  { %866 = vmatpush3.bf16.msra.mxu1 %v865_v22 }
 0x140   :  { %867 = vmatprep.subr.bf16.mxu1 %v1013_v0 }
 0x143   :  { %869 = vmatpush3.bf16.msra.mxu1 %v868_v25 }
 0x144   :  { %870 = vmatprep.subr.bf16.mxu1 %v1013_v0 }
 0x147   :  { %872 = vmatpush3.bf16.msra.mxu1 %v871_v28 }
 0x148   :  { %873 = vmatprep.subr.bf16.mxu1 %v1013_v0 }
 0x14b   :  { %875 = vmatpush3.bf16.msra.mxu1 %v874_v31 }
 0x14c   :  { %876 = vmatprep.subr.bf16.mxu1 %v1013_v0 }
 0x14f   :  { %878 = vmatpush3.bf16.msra.mxu1 %v877_v39 }
 0x205   :  { %v399_v33 = vpop.f32.mrb[0].mxu1 }
 0x206   :  { %v400_v34 = vadd.f32 %v609_v32, %v399_v33  ;;  %v727_v35 = vpop.f32.mrb[1].mxu1 }
 0x208   :  { %v403_v36 = vmax.f32 %v400_v34, 0.0 }
 0x20a   :  { %761 = vmatmul.mubr.f32.vlgmr.msra.gmra.mrb[6].mxu0 %v403_v36 }
 0x2dd   :  { %v491_v41 = vpop.f32.mrb[6].mxu0 }
 0x2de   :  { %v492_v42 = vadd.f32 %v610_v40, %v491_v41  ;;  %v762_v0 = vpop.f32.mrb[7].mxu0 }
 0x2e0   :  { %v495_v43 = vmax.f32 %v492_v42, 0.0 }
 0x2e2   :  { %796 = vmatmul.mubr.f32.vlgmr.msra.gmra.mrb[2].mxu1 %v495_v43 }
 0x3b5   :  { %v583_v45 = vpop.f32.mrb[2].mxu1 }
 0x3b6   :  { %v584_v46 = vadd.f32 %v611_v44, %v583_v45  ;;  %v797_v47 = vpop.f32.mrb[3].mxu1 }
 0x3b8   :  { %587 = vst [vmem:[#allocation10] sm:$0xff] %v584_v46 }
 0x3b9   :  { %988 = shalt.err (!%p985_p8)
}
 0x3ba   :  { %s989_s0 = scalar_lea.hbm %s1166_s5, 128 }
 0x3bb   :  { %p990_p9 = scmp.ne.s32.totalorder %s1166_s5, %s989_s0  ;;  %p993_p10 = scmp.lt.u32.totalorder %s989_s0, %s1166_s5 }
 0x3bd   :  { %p995_p11 = pnand %p993_p10, %p990_p9 }
 0x3bf   :  { %998 = shalt.err (!%p995_p11)
}
 0x3c0   :  { %597 = dma.vmem_to_hbm [thread:$0]  %s595_s23, 128, %s1166_s5, [#allocation4]  }
 0x3c1   :  { %1005 = dma.done.wait [#allocation4], 128  }
 0x3c2   :  { %1006 = vsyncadd [#allocation4], 4294967168 }
 0x3c3   :  { %601 = vsyncpa [#allocation3], 1 }
 0x3c4   :  { %602 = vsyncpa [#allocation6], 1 }
 0x3c5   :  { %603 = vsyncpa [#allocation9], 1 }
 0x3c6   :  { %604 = vsyncpa [#allocation4], 1 }

</bundles_post_ra>
